<compile_context>
chip_gen: v5e
topology: v5e:2x2
jax: 0.10.0
libtpu: 0.0.40
codegen_flags: <defaults>
</compile_context>

<pallas_src>
import functools

import jax
import jax.numpy as jnp
from jax.experimental import pallas as pl
from jax.experimental.pallas import tpu as pltpu


def _critic_kernel(x_ref, wa_ref, wb_ref, q_ref, *, in_dim, two_l):
    # x: [in_dim, tile_b] (feature-major), wa: [2L, in_dim + 1 + 2L + 1],
    # wb: [2, 2L + 1], q: [2, tile_b].
    x = x_ref[...]
    wa = wa_ref[...]
    wb = wb_ref[...]

    w1t = wa[:, :in_dim]                                  # [2L, in_dim]
    b1 = wa[:, in_dim:in_dim + 1]                         # [2L, 1]
    w2t = wa[:, in_dim + 1:in_dim + 1 + two_l]            # [2L, 2L]
    b2 = wa[:, in_dim + 1 + two_l:in_dim + 2 + two_l]     # [2L, 1]
    w3t = wb[:, :two_l]                                   # [2, 2L]
    b3 = wb[:, two_l:two_l + 1]                           # [2, 1]

    # Layer 1: fused twin heads.
    h = jnp.dot(w1t, x, preferred_element_type=jnp.float32) + b1
    h = jnp.maximum(h, 0.0)
    # Layer 2: block-diagonal (W2 ⊕ W5), transposed.
    h = jnp.dot(w2t, h, preferred_element_type=jnp.float32) + b2
    h = jnp.maximum(h, 0.0)
    # Layer 3: lane-dense [2, tile_b] output (row 0 = q1, row 1 = q2).
    q = jnp.dot(w3t, h, preferred_element_type=jnp.float32) + b3
    q_ref[...] = q.astype(q_ref.dtype)


def pack_params(params):
    """Fuse the twin-head weights into two packed, transposed slabs (offline)."""
    latent = params["w1"].shape[1]
    in_dim = params["w1"].shape[0]
    two_l = 2 * latent

    # Layer 1: (W1 || W4)^T -> [2L, in_dim]; bias -> [2L, 1].
    w1t = jnp.concatenate([params["w1"], params["w4"]], axis=1).T
    b1t = jnp.concatenate([params["b1"], params["b4"]], axis=1).T

    # Layer 2: blockdiag(W2, W5)^T = blockdiag(W2^T, W5^T) -> [2L, 2L].
    w2t = jnp.zeros((two_l, two_l), jnp.float32)
    w2t = w2t.at[:latent, :latent].set(params["w2"].T)
    w2t = w2t.at[latent:, latent:].set(params["w5"].T)
    b2t = jnp.concatenate([params["b2"], params["b5"]], axis=1).T

    # Layer 3: row 0 <- W3^T (first L cols), row 1 <- W6^T (last L cols).
    w3t = jnp.zeros((2, two_l), jnp.float32)
    w3t = w3t.at[0:1, :latent].set(params["w3"].T)
    w3t = w3t.at[1:2, latent:].set(params["w6"].T)
    b3t = jnp.concatenate([params["b3"], params["b6"]], axis=1).T

    # Merge all constants into two packed slabs.
    wa = jnp.concatenate([w1t, b1t, w2t, b2t], axis=1)    # [2L, in_dim + 2L + 2]
    wb = jnp.concatenate([w3t, b3t], axis=1)              # [2, 2L + 1]
    return dict(wa=wa, wb=wb, in_dim=in_dim, two_l=two_l)


def _round_up(x, m):
    return ((x + m - 1) // m) * m


def critic_forward(state, action, packed, *, tile_b_max=8192, small_b=256):
    """Pallas twin-critic forward on packed params. Returns (q1, q2), each [B, 1]."""
    B = state.shape[0]
    in_dim = packed["in_dim"]
    two_l = packed["two_l"]

    # Single fused feature-major operand [in_dim, B] (no per-head split, no
    # host-side zero padding of the batch).
    x = jnp.concatenate([state.T, action.T], axis=0).astype(jnp.float32)

    # Batch lives on the lane axis: a block must span the full batch or be a
    # multiple of 128 lanes.  For B > small_b force >= 2 grid steps so the
    # "parallel" axis can shard across both v7x TensorCores; the ragged final
    # block is handled by Pallas masked edge loads/stores.
    if B <= small_b:
        tile_b = B
    else:
        tile_b = min(_round_up(tile_b_max, 128),
                     _round_up(pl.cdiv(B, 2), 128))
    grid = (pl.cdiv(B, tile_b),)

    flops = 2 * B * (in_dim * two_l + two_l * two_l + two_l * 2)
    bytes_accessed = 4 * (B * (in_dim + 2)
                          + packed["wa"].size + packed["wb"].size)

    kernel = functools.partial(_critic_kernel, in_dim=in_dim, two_l=two_l)

    q = pl.pallas_call(
        kernel,
        out_shape=jax.ShapeDtypeStruct((2, B), jnp.float32),
        grid=grid,
        in_specs=[
            pl.BlockSpec((in_dim, tile_b), lambda i: (0, i)),
            pl.BlockSpec(packed["wa"].shape, lambda i: (0, 0)),
            pl.BlockSpec(packed["wb"].shape, lambda i: (0, 0)),
        ],
        out_specs=pl.BlockSpec((2, tile_b), lambda i: (0, i)),
        compiler_params=pltpu.CompilerParams(
            dimension_semantics=("parallel",)),
        cost_estimate=pl.CostEstimate(
            flops=flops, transcendentals=0, bytes_accessed=bytes_accessed),
    )(x, packed["wa"], packed["wb"])

    qt = q.T                       # [B, 2]
    return qt[:, 0:1], qt[:, 1:2]


def init_params(key, state_dim=3, action_dim=1, latent_dim=10):
    """Deterministic synthetic parameters mirroring nn.Linear shapes
    (stored as [in, out] so the reference math is x @ W + b)."""
    in_dim = state_dim + action_dim
    dims = [
        ("w1", (in_dim, latent_dim)), ("b1", (1, latent_dim)),
        ("w2", (latent_dim, latent_dim)), ("b2", (1, latent_dim)),
        ("w3", (latent_dim, 1)), ("b3", (1, 1)),
        ("w4", (in_dim, latent_dim)), ("b4", (1, latent_dim)),
        ("w5", (latent_dim, latent_dim)), ("b5", (1, latent_dim)),
        ("w6", (latent_dim, 1)), ("b6", (1, 1)),
    ]
    params = {}
    for name, shape in dims:
        key, sub = jax.random.split(key)
        fan_in = shape[0] if name.startswith("w") else shape[1]
        bound = 1.0 / jnp.sqrt(jnp.float32(fan_in))
        params[name] = jax.random.uniform(sub, shape, jnp.float32, -bound, bound)
    return params


def critic_forward_ref(state, action, params):
    """Pure-JAX reference matching the PyTorch forward."""
    sa = jnp.concatenate([state, action], axis=1)
    h = jax.nn.relu(sa @ params["w1"] + params["b1"])
    h = jax.nn.relu(h @ params["w2"] + params["b2"])
    q1 = h @ params["w3"] + params["b3"]
    g = jax.nn.relu(sa @ params["w4"] + params["b4"])
    g = jax.nn.relu(g @ params["w5"] + params["b5"])
    q2 = g @ params["w6"] + params["b6"]
    return q1, q2


if __name__ == "__main__":
    key = jax.random.PRNGKey(0)
    k_param, k_state, k_action = jax.random.split(key, 3)

    state_dim, action_dim, latent_dim = 3, 1, 10
    batch = 8

    params = init_params(k_param, state_dim, action_dim, latent_dim)
    packed = pack_params(params)

    state = jax.random.normal(k_state, (batch, state_dim), jnp.float32)
    action = jax.random.normal(k_action, (batch, action_dim), jnp.float32)

    q1, q2 = critic_forward(state, action, packed)
    q1 = jax.block_until_ready(q1)
    q2 = jax.block_until_ready(q2)

    q1_ref, q2_ref = critic_forward_ref(state, action, params)
    assert q1.shape == (batch, 1) and q2.shape == (batch, 1)
    assert jnp.allclose(q1, q1_ref, atol=1e-5, rtol=1e-5)
    assert jnp.allclose(q2, q2_ref, atol=1e-5, rtol=1e-5)

    # Exercise the multi-tile grid + ragged final block (no host padding).
    batch2 = 300
    k_s2, k_a2 = jax.random.split(jax.random.PRNGKey(1))
    state2 = jax.random.normal(k_s2, (batch2, state_dim), jnp.float32)
    action2 = jax.random.normal(k_a2, (batch2, action_dim), jnp.float32)
    q1b, q2b = critic_forward(state2, action2, packed)
    q1b = jax.block_until_ready(q1b)
    q2b = jax.block_until_ready(q2b)
    q1b_ref, q2b_ref = critic_forward_ref(state2, action2, params)
    assert q1b.shape == (batch2, 1) and q2b.shape == (batch2, 1)
    assert jnp.allclose(q1b, q1b_ref, atol=1e-5, rtol=1e-5)
    assert jnp.allclose(q2b, q2b_ref, atol=1e-5, rtol=1e-5)

    print("KERNEL_OK")
</pallas_src>

<mosaic_0001>
module attributes {stable_mosaic.version = 11 : i64} {
  func.func @_critic_kernel(%arg0: i32, %arg1: memref<4x8xf32, #tpu.memory_space<vmem>>, %arg2: memref<20x26xf32, #tpu.memory_space<vmem>>, %arg3: memref<2x21xf32, #tpu.memory_space<vmem>>, %arg4: memref<2x8xf32, #tpu.memory_space<vmem>>) attributes {dimension_semantics = [#tpu.dimension_semantics<parallel>], iteration_bounds = array<i64: 1>, scalar_prefetch = 0 : i64, scratch_operands = 0 : i64, tpu.core_type = #tpu.core_type<tc>, window_params = [{transform_indices = @transform_0, window_bounds = array<i64: 4, 8>}, {pipeline_mode = #tpu.pipeline_mode<synchronous>, transform_indices = @transform_1, window_bounds = array<i64: 20, 26>}, {pipeline_mode = #tpu.pipeline_mode<synchronous>, transform_indices = @transform_2, window_bounds = array<i64: 2, 21>}, {transform_indices = @transform_3, window_bounds = array<i64: 2, 8>}]} {
    %c0 = arith.constant 0 : index
    %c0_0 = arith.constant 0 : index
    %0 = vector.load %arg1[%c0, %c0_0] : memref<4x8xf32, #tpu.memory_space<vmem>>, vector<4x8xf32>
    %c0_1 = arith.constant 0 : index
    %c0_2 = arith.constant 0 : index
    %1 = vector.load %arg2[%c0_1, %c0_2] : memref<20x26xf32, #tpu.memory_space<vmem>>, vector<20x26xf32>
    %c0_3 = arith.constant 0 : index
    %c0_4 = arith.constant 0 : index
    %2 = vector.load %arg3[%c0_3, %c0_4] : memref<2x21xf32, #tpu.memory_space<vmem>>, vector<2x21xf32>
    %3 = vector.extract_strided_slice %1 {offsets = [0, 0], sizes = [20, 4], strides = [1, 1]} : vector<20x26xf32> to vector<20x4xf32>
    %4 = vector.extract_strided_slice %1 {offsets = [0, 4], sizes = [20, 1], strides = [1, 1]} : vector<20x26xf32> to vector<20x1xf32>
    %5 = vector.extract_strided_slice %1 {offsets = [0, 5], sizes = [20, 20], strides = [1, 1]} : vector<20x26xf32> to vector<20x20xf32>
    %6 = vector.extract_strided_slice %1 {offsets = [0, 25], sizes = [20, 1], strides = [1, 1]} : vector<20x26xf32> to vector<20x1xf32>
    %7 = vector.extract_strided_slice %2 {offsets = [0, 0], sizes = [2, 20], strides = [1, 1]} : vector<2x21xf32> to vector<2x20xf32>
    %8 = vector.extract_strided_slice %2 {offsets = [0, 20], sizes = [2, 1], strides = [1, 1]} : vector<2x21xf32> to vector<2x1xf32>
    %cst = arith.constant dense<0.000000e+00> : vector<20x8xf32>
    %9 = tpu.matmul %3, %0, %cst {dimension_numbers = #tpu.dot_dimension_numbers<[1], [0], [0], [1], [0, 0, 1, 1], [], []>} : vector<20x4xf32>, vector<4x8xf32>, vector<20x8xf32> -> vector<20x8xf32>
    %10 = vector.broadcast %4 : vector<20x1xf32> to vector<20x8xf32>
    %11 = arith.addf %9, %10 : vector<20x8xf32>
    %cst_5 = arith.constant 0.000000e+00 : f32
    %12 = vector.broadcast %cst_5 : f32 to vector<20x8xf32>
    %13 = arith.maximumf %11, %12 : vector<20x8xf32>
    %cst_6 = arith.constant dense<0.000000e+00> : vector<20x8xf32>
    %14 = tpu.matmul %5, %13, %cst_6 {dimension_numbers = #tpu.dot_dimension_numbers<[1], [0], [0], [1], [0, 0, 1, 1], [], []>} : vector<20x20xf32>, vector<20x8xf32>, vector<20x8xf32> -> vector<20x8xf32>
    %15 = vector.broadcast %6 : vector<20x1xf32> to vector<20x8xf32>
    %16 = arith.addf %14, %15 : vector<20x8xf32>
    %cst_7 = arith.constant 0.000000e+00 : f32
    %17 = vector.broadcast %cst_7 : f32 to vector<20x8xf32>
    %18 = arith.maximumf %16, %17 : vector<20x8xf32>
    %cst_8 = arith.constant dense<0.000000e+00> : vector<2x8xf32>
    %19 = tpu.matmul %7, %18, %cst_8 {dimension_numbers = #tpu.dot_dimension_numbers<[1], [0], [0], [1], [0, 0, 1, 1], [], []>} : vector<2x20xf32>, vector<20x8xf32>, vector<2x8xf32> -> vector<2x8xf32>
    %20 = vector.broadcast %8 : vector<2x1xf32> to vector<2x8xf32>
    %21 = arith.addf %19, %20 : vector<2x8xf32>
    %c0_9 = arith.constant 0 : index
    %c0_10 = arith.constant 0 : index
    %22 = vector.load %arg4[%c0_9, %c0_10] : memref<2x8xf32, #tpu.memory_space<vmem>>, vector<2x8xf32>
    tpu.vector_store %arg4[%c0_9, %c0_10], %21 {strides = array<i32>} : memref<2x8xf32, #tpu.memory_space<vmem>>, vector<2x8xf32>,
    return
  }
  func.func @transform_0(%arg0: i32) -> (i32, i32) {
    %c0_i32 = arith.constant 0 : i32
    %c0_i32_0 = arith.constant 0 : i32
    return %c0_i32, %arg0 : i32, i32
  }
  func.func @transform_1(%arg0: i32) -> (i32, i32) {
    %c0_i32 = arith.constant 0 : i32
    %c0_i32_0 = arith.constant 0 : i32
    %c0_i32_1 = arith.constant 0 : i32
    return %c0_i32, %c0_i32_0 : i32, i32
  }
  func.func @transform_2(%arg0: i32) -> (i32, i32) {
    %c0_i32 = arith.constant 0 : i32
    %c0_i32_0 = arith.constant 0 : i32
    %c0_i32_1 = arith.constant 0 : i32
    return %c0_i32, %c0_i32_0 : i32, i32
  }
  func.func @transform_3(%arg0: i32) -> (i32, i32) {
    %c0_i32 = arith.constant 0 : i32
    %c0_i32_0 = arith.constant 0 : i32
    return %c0_i32, %arg0 : i32, i32
  }
}

</mosaic_0001>

<bundles_post_ra>
// kernel: tpu_custom_call.1
= control target key start
LH: loop header
LB: loop body
LE: loop exit
PB: predicated region body
PF: predicated region fallthrough
CT: control target
= control target key end

     0   :  { %8 = vsyncpa [#allocation3], 0  ;;  %s409_s0 = inlined_call_operand.hbm [shape: f32[4,8], index: 0, kind: input, shape index: {}]   ;;  %s410_s1 = inlined_call_operand.hbm [shape: f32[20,26], index: 1, kind: input, shape index: {}]   ;;  %s411_s2 = inlined_call_operand.hbm [shape: f32[2,21], index: 2, kind: input, shape index: {}]   ;;  %s412_s3 = inlined_call_operand.hbm [shape: f32[2,8], index: 3, kind: output, shape index: {}]  }
   0x1   :  { %9 = vsyncpa [#allocation6], 0  ;;  %s26_s14 = sshll.u32 %s410_s1, 4  ;;  %s27_s14 = int_to_ptr.hbm [resolvable:$true] %s26_s14 }
   0x2   :  { %10 = vsyncpa [#allocation4], 0  ;;  %s358_s15 = smov [#allocation5]   ;;  %s16_s19 = sshll.u32 %s409_s0, 4  ;;  %s17_s19 = int_to_ptr.hbm [resolvable:$true] %s16_s19 }
   0x3   :  { %s28_s16 = sshll.u32 %s358_s15, 4  ;;  %s359_s20 = smov 128   ;;  %s29_s16 = int_to_ptr.vmem [resolvable:$true] %s28_s16 }
   0x4   :  { %s360_s21 = smov 8   ;;  %s361_s22 = smov [#allocation2]  }
   0x5   :  { %34 = dma.hbm_to_vmem [thread:$0]  %s27_s14, 384, %s29_s16, [#allocation6], %s359_s20, %s359_s20, %s360_s21  }
   0x6   :  { %s18_s23 = sshll.u32 %s361_s22, 4  ;;  %s40_s26 = sshll.u32 %s411_s2, 4  ;;  %s19_s23 = int_to_ptr.vmem [resolvable:$true] %s18_s23  ;;  %s41_s26 = int_to_ptr.hbm [resolvable:$true] %s40_s26 }
   0x7   :  { %21 = dma.hbm_to_vmem [thread:$0]  %s17_s19, 64, %s19_s23, [#allocation3]  }
   0x8   :  { %s362_s1 = smov [#allocation7]  }
   0x9   :  { %s42_s27 = sshll.u32 %s362_s1, 4  ;;  %s43_s27 = int_to_ptr.vmem [resolvable:$true] %s42_s27 }
   0xa   :  { %45 = dma.hbm_to_vmem [thread:$0]  %s41_s26, 32, %s43_s27, [#allocation6]  }
   0xb   :  { %352 = dma.done.wait [#allocation3], 64  }
   0xc   :  { %353 = vsyncadd [#allocation3], 4294967232 }
   0xd   :  { %354 = dma.done.wait [#allocation6], 416  }
   0xe   :  { %355 = vsyncadd [#allocation6], 4294966880  ;;  %v363_v0 = vmov 4   ;;  %vm85_vm0 = vcmask 1043456   ;;  %vm78_vm1 = vcmask 31744   ;;  %v59_v2 = vld [vmem:[#allocation5] sm:$0xff] }
   0xf   :  { %249 = vset.pattern.permute.xlu0 %v363_v0  ;;  %250 = vset.pattern.permute.xlu1 %v363_v0  ;;  %v58_v1 = vld [vmem:[#allocation2] sm:$0xf]  ;;  %v61_v3 = vld [vmem:[#allocation5 + $0x10] sm:$0xf]  ;;  %s364_s0 = smov 123   ;;  %v60_v4 = vld [vmem:[#allocation5 + $0x8] sm:$0xff] }
  0x10   :  { %225 = vmatpush.msk.msra.mxu0 %vm85_vm0, %v58_v1  ;;  %235 = vmatpush.msk.msra.mxu1 %vm85_vm0, %v58_v1  ;;  %v365_v5 = vmov 25   ;;  %vm136_vm2 = vcmask 162816   ;;  %v62_v21 = vld [vmem:[#allocation7] sm:$0x3]  ;;  %v366_v22 = vmov 20   ;;  %s367_s2 = smov [#allocation8]  }
  0x11   :  { %226 = vmatmul.msk.f32.vlgmr.msra.gmra.mxu0 %vm78_vm1, %v59_v2  ;;  %228 = vmatmul.msk.f32.vlgmr.msra.gmra.mxu1 %vm78_vm1, %v61_v3  ;;  %s212_s28 = sshll.u32 %s367_s2, 4  ;;  %s214_s4 = sshll.u32 %s412_s3, 4  ;;  %vm205_vm3 = vcmask 58368   ;;  %s213_s28 = int_to_ptr.vmem [resolvable:$true] %s212_s28  ;;  %s215_s4 = int_to_ptr.hbm [resolvable:$true] %s214_s4 }
  0x12   :  { %75 = vperm.xlu0 %249, %v61_v3   ;;  %65 = vperm.xlu1 %250, %v59_v2  }
  0x13   :  { %134 = vrot.lane.b32.xlu2 %v61_v3, %s364_s0 }
  0x14   :  { %253 = vset.pattern.permute.xlu2 %v365_v5 }
  0x19   :  { %227 = vmatmul.msk.f32.gmra.mxu0 %vm78_vm1, %v60_v4 }
  0x1a   :  { %70 = vperm.xlu0 %249, %v60_v4   ;;  %132 = vrot.lane.b32.xlu1 %v60_v4, %s364_s0 }
  0x1b   :  { %130 = vrot.lane.b32.xlu2 %v59_v2, %s364_s0  ;;  %252 = vset.pattern.permute.xlu1 %v365_v5 }
  0x22   :  { %251 = vset.pattern.permute.xlu0 %v365_v5  ;;  %123 = vperm.xlu1 %252, %v60_v4  }
  0x23   :  { %127 = vperm.xlu0 %251, %v61_v3   ;;  %119 = vperm.xlu2 %253, %v59_v2  }
  0x2a   :  { %254 = vset.pattern.permute.xlu1 %v366_v22 }
  0x2b   :  { %255 = vset.pattern.permute.xlu0 %v366_v22  ;;  %177 = vperm.xlu1 %254, %v62_v21  }
  0x6d   :  { %v135_v12 = vpop.permute.xlu2 %134 }
  0x75   :  { %v131_v20 = vpop.permute.xlu2 %130 }
  0x7d   :  { %v120_v26 = vpop.permute.xlu2 %119 }
  0x84   :  { %v76_v6 = vpop.permute.xlu0 %75  ;;  %v66_v11 = vpop.permute.xlu1 %65 }
  0x8c   :  { %v71_v13 = vpop.permute.xlu0 %70  ;;  %v133_v19 = vpop.permute.xlu1 %132 }
  0x8e   :  { %v106_v7 = vpop.f32.mrf.mxu0  ;;  %v112_v8 = vpop.f32.mrf.mxu1 }
  0x8f   :  { %v113_v9 = vadd.f32 %v112_v8, %v76_v6  ;;  %v107_v15 = vadd.f32 %v106_v7, %v66_v11 }
  0x91   :  { %v117_v10 = vmax.f32 %v113_v9, 0.0  ;;  %v115_v18 = vmax.f32 %v107_v15, 0.0 }
  0x93   :  { %229 = vmatpush.msk.msrb.mxu1 %vm85_vm0, %v117_v10  ;;  %236 = vmatpush.msk.msra.mxu3 %vm85_vm0, %v117_v10 }
  0x94   :  { %v124_v24 = vpop.permute.xlu1 %123 }
  0x95   :  { %v128_v25 = vpop.permute.xlu0 %127 }
  0x96   :  { %v109_v14 = vpop.f32.mrf.mxu0 }
  0x97   :  { %v110_v16 = vadd.f32 %v109_v14, %v71_v13 }
  0x99   :  { %v116_v17 = vmax.f32 %v110_v16, 0.0 }
  0x9b   :  { %160 = vmatpush.msrb.mxu1 %v116_v17  ;;  %237 = vmatpush.msra.mxu3 %v116_v17 }
  0x9d   :  { %161 = vmatpush.msrb.mxu1 %v115_v18  ;;  %238 = vmatpush.msra.mxu3 %v115_v18  ;;  %v178_v35 = vpop.permute.xlu1 %177 }
  0x9e   :  { %231 = vmatmul.msk.f32.vlgmr.msra.gmra.mxu3 %vm136_vm2, %v133_v19  ;;  %230 = vmatmul.msk.f32.vlgmr.msrb.gmra.mxu1 %vm136_vm2, %v131_v20 }
  0xa6   :  { %232 = vmatmul.msk.f32.gmra.mxu3 %vm136_vm2, %v135_v12 }
 0x11b   :  { %v163_v27 = vpop.f32.mrf.mxu1 }
 0x11c   :  { %v164_v31 = vadd.f32 %v163_v27, %v120_v26 }
 0x11e   :  { %v172_v34 = vmax.f32 %v164_v31, 0.0 }
 0x121   :  { %v166_v23 = vpop.f32.mrf.mxu3 }
 0x122   :  { %v167_v29 = vadd.f32 %v166_v23, %v124_v24 }
 0x124   :  { %v173_v33 = vmax.f32 %v167_v29, 0.0 }
 0x129   :  { %v169_v28 = vpop.f32.mrf.mxu3 }
 0x12a   :  { %v170_v30 = vadd.f32 %v169_v28, %v128_v25 }
 0x12c   :  { %v174_v32 = vmax.f32 %v170_v30, 0.0 }
 0x12e   :  { %233 = vmatpush.msk.msra.mxu2 %vm85_vm0, %v174_v32 }
 0x130   :  { %199 = vmatpush.msra.mxu2 %v173_v33 }
 0x132   :  { %200 = vmatpush.msra.mxu2 %v172_v34 }
 0x133   :  { %234 = vmatmul.msk.f32.vlgmr.msra.gmra.mxu2 %vm136_vm2, %v62_v21 }
 0x1b6   :  { %v202_v36 = vpop.f32.mrf.mxu2 }
 0x1b7   :  { %v203_v37 = vadd.f32 %v202_v36, %v178_v35 }
 0x1b9   :  { %206 = vst.msk [vmem:[#allocation8] sm:$0x3] %vm205_vm3, %v203_v37 }
 0x1ba   :  { %217 = dma.vmem_to_hbm [thread:$0]  %s213_s28, 32, %s215_s4, [#allocation4]  }
 0x1bb   :  { %356 = dma.done.wait [#allocation4], 32  }
 0x1bc   :  { %357 = vsyncadd [#allocation4], 4294967264 }
 0x1bd   :  { %222 = vsyncpa [#allocation3], 1 }
 0x1be   :  { %223 = vsyncpa [#allocation6], 1 }
 0x1bf   :  { %224 = vsyncpa [#allocation4], 1 }

</bundles_post_ra>
